<compile_context>
chip_gen: v7x
topology: tpu7x:2x2x1
jax: 0.10.0
libtpu: 0.0.40
codegen_flags: <defaults>
</compile_context>

<pallas_src>
import functools

import jax
import jax.numpy as jnp
from jax import lax
from jax.experimental import pallas as pl
from jax.experimental.pallas import tpu as pltpu


def _vmem_limit_bytes():
    """~85% of physical VMEM (128 MiB v5e/v6e, 64 MiB v7x); safe fallback."""
    try:
        cap = int(pltpu.get_tpu_info().vmem_capacity_bytes)
        return max(32 * 1024 * 1024, min(int(cap * 0.85), 112 * 1024 * 1024))
    except Exception:
        return 48 * 1024 * 1024


_VMEM_LIMIT = _vmem_limit_bytes()


# ---------------------------------------------------------------------------
# Stage 1: per-head projection  x @ W[h]  emitted directly in (H, S, d) layout
# ---------------------------------------------------------------------------
def _proj_head_kernel(x_ref, w_ref, o_ref, *, mxu_dtype):
    x = x_ref[...].astype(mxu_dtype)
    w = w_ref[0].astype(mxu_dtype)
    o_ref[0] = jnp.dot(x, w, preferred_element_type=jnp.float32).astype(o_ref.dtype)


def _project_heads(x, w_heads, row_tile, mxu_dtype):
    """x: (S, d_in), w_heads: (H, d_in, d_out) -> (H, S, d_out) in mxu_dtype."""
    S, d_in = x.shape
    H, _, d_out = w_heads.shape
    return pl.pallas_call(
        functools.partial(_proj_head_kernel, mxu_dtype=mxu_dtype),
        out_shape=jax.ShapeDtypeStruct((H, S, d_out), mxu_dtype),
        grid_spec=pltpu.PrefetchScalarGridSpec(
            num_scalar_prefetch=0,
            grid=(S // row_tile, H),
            in_specs=[
                # x tile depends only on the row index -> resident across heads
                pl.BlockSpec((row_tile, d_in), lambda i, h: (i, 0)),
                pl.BlockSpec((1, d_in, d_out), lambda i, h: (h, 0, 0)),
            ],
            out_specs=pl.BlockSpec((1, row_tile, d_out), lambda i, h: (h, i, 0)),
        ),
        compiler_params=pltpu.CompilerParams(
            dimension_semantics=("parallel", "parallel"),
            vmem_limit_bytes=_VMEM_LIMIT),
    )(x, w_heads)


# ---------------------------------------------------------------------------
# Stage 2: flash-style attention + fused output projection (sum over heads)
# ---------------------------------------------------------------------------
def _flash_mha_kernel(q_ref, k_ref, v_ref, wo_ref, *rest, mask_mode):
    if mask_mode == "dense":
        mask_ref, o_ref, m_sc, l_sc, acc_sc = rest
    else:
        o_ref, m_sc, l_sc, acc_sc = rest

    qi = pl.program_id(0)
    h = pl.program_id(1)
    ki = pl.program_id(2)
    nk = pl.num_programs(2)
    tq = q_ref.shape[1]
    tk = k_ref.shape[1]

    @pl.when(jnp.logical_and(h == 0, ki == 0))
    def _init_out():
        o_ref[...] = jnp.zeros_like(o_ref)

    @pl.when(ki == 0)
    def _init_state():
        m_sc[...] = jnp.full_like(m_sc, -jnp.inf)
        l_sc[...] = jnp.zeros_like(l_sc)
        acc_sc[...] = jnp.zeros_like(acc_sc)

    def _body():
        q = q_ref[0]          # (tq, d_k) bf16 -- 1/sqrt(d_k) folded into W_q
        k = k_ref[0]          # (tk, d_k) bf16
        v = v_ref[0]          # (tk, d_v) bf16
        # Contract Q/K on their last axes: MXU consumes K directly, no .T/XLU.
        s = lax.dot_general(q, k, (((1,), (1,)), ((), ())),
                            preferred_element_type=jnp.float32)      # (tq, tk)
        if mask_mode == "dense":
            s = jnp.where(mask_ref[...] != 0, jnp.float32(-1e9), s)  # masked_fill
        elif mask_mode == "causal":
            rows = qi * tq + lax.broadcasted_iota(jnp.int32, (tq, tk), 0)
            cols = ki * tk + lax.broadcasted_iota(jnp.int32, (tq, tk), 1)
            s = jnp.where(cols > rows, jnp.float32(-1e9), s)

        m_prev = m_sc[...]
        m_new = jnp.maximum(m_prev, jnp.max(s, axis=-1, keepdims=True))
        alpha = jnp.exp(m_prev - m_new)
        p = jnp.exp(s - m_new)
        l_sc[...] = alpha * l_sc[...] + jnp.sum(p, axis=-1, keepdims=True)
        acc_sc[...] = alpha * acc_sc[...] + jnp.dot(
            p.astype(v.dtype), v, preferred_element_type=jnp.float32)
        m_sc[...] = m_new

    if mask_mode == "causal":
        # Skip kv tiles entirely above the diagonal (~2x less work).
        pl.when(ki * tk < (qi + 1) * tq)(_body)
    else:
        _body()

    @pl.when(ki == nk - 1)
    def _finalize():
        inv_l = pl.reciprocal(l_sc[...], approx=True)
        head_out = (acc_sc[...] * inv_l).astype(wo_ref.dtype)
        # concat-over-heads + final Linear == sum_h head_h @ Wo_h
        o_ref[...] += jnp.dot(head_out, wo_ref[h],
                              preferred_element_type=jnp.float32)


def _choose_tile(n, requested, candidates):
    if requested is not None and 0 < requested <= n and n % requested == 0:
        return requested
    for c in candidates:
        if c <= n and n % c == 0:
            return c
    return n


def multi_head_attention(enc_q, enc_k, enc_v, wq, wk, wv, wo, mask=None,
                         causal=False, q_tile=None, k_tile=None,
                         mxu_dtype=jnp.bfloat16):
    """Forward pass of the PyTorch MultiHeadAttention module.

    enc_q: (Sq, d_model); enc_k/enc_v: (Sk, d_model).
    wq/wk: (H, d_model, d_k), wv: (H, d_model, d_v), wo: (H, d_v, d_model).
    mask: optional (Sq, Sk) bool/int; nonzero entries filled with -1e9.
    causal=True builds the causal mask in-kernel (zero mask DMA; `mask` ignored).
    Returns (Sq, d_model) float32.
    """
    Sq, d_model = enc_q.shape
    Sk = enc_k.shape[0]
    H, _, d_k = wq.shape
    d_v = wv.shape[-1]
    scale = 1.0 / float(d_k) ** 0.5

    if causal:
        mask_mode = "causal"
    elif mask is not None:
        mask_mode = "dense"
    else:
        mask_mode = "none"

    # MXU-native bf16 weights; score scale folded into W_q (mathematically id.).
    wq_h = (wq.astype(jnp.float32) * scale).astype(mxu_dtype)   # (H, d_model, d_k)
    wk_h = wk.astype(mxu_dtype)
    wv_h = wv.astype(mxu_dtype)
    wo_h = wo.astype(mxu_dtype)                                  # (H, d_v, d_model)

    tq = _choose_tile(Sq, q_tile, (256, 128, 512, 64, 32, 16, 8))
    tk = _choose_tile(Sk, k_tile, (512, 256, 128, 64, 32, 16, 8))

    # Stage 1: per-head projections, written directly in (H, S, d) layout
    # (no host-side transpose materialization between the two stages).
    q_h = _project_heads(enc_q, wq_h, tq, mxu_dtype)     # (H, Sq, d_k)
    k_h = _project_heads(enc_k, wk_h, tk, mxu_dtype)     # (H, Sk, d_k)
    v_h = _project_heads(enc_v, wv_h, tk, mxu_dtype)     # (H, Sk, d_v)

    in_specs = [
        pl.BlockSpec((1, tq, d_k), lambda qi, h, ki: (h, qi, 0)),
        pl.BlockSpec((1, tk, d_k), lambda qi, h, ki: (h, ki, 0)),
        pl.BlockSpec((1, tk, d_v), lambda qi, h, ki: (h, ki, 0)),
        # W_out: one full block with constant index -> DMA'd once, stays resident
        pl.BlockSpec((H, d_v, d_model), lambda qi, h, ki: (0, 0, 0)),
    ]
    inputs = [q_h, k_h, v_h, wo_h]
    if mask_mode == "dense":
        in_specs.append(pl.BlockSpec((tq, tk), lambda qi, h, ki: (qi, ki)))
        inputs.append(mask.astype(jnp.int8))             # int8: 4x less mask DMA

    grid_spec = pltpu.PrefetchScalarGridSpec(
        num_scalar_prefetch=0,
        grid=(Sq // tq, H, Sk // tk),
        in_specs=in_specs,
        out_specs=pl.BlockSpec((tq, d_model), lambda qi, h, ki: (qi, 0)),
        scratch_shapes=[
            pltpu.VMEM((tq, 1), jnp.float32),      # running max
            pltpu.VMEM((tq, 1), jnp.float32),      # running sum
            pltpu.VMEM((tq, d_v), jnp.float32),    # unnormalized P@V accumulator
        ],
    )

    return pl.pallas_call(
        functools.partial(_flash_mha_kernel, mask_mode=mask_mode),
        out_shape=jax.ShapeDtypeStruct((Sq, d_model), jnp.float32),
        grid_spec=grid_spec,
        compiler_params=pltpu.CompilerParams(
            dimension_semantics=("parallel", "arbitrary", "arbitrary"),
            vmem_limit_bytes=_VMEM_LIMIT),
    )(*inputs)


# ---------------------------------------------------------------------------
# Plain-JAX reference mirroring the PyTorch module (f32 throughout)
# ---------------------------------------------------------------------------
def reference_mha(enc_q, enc_k, enc_v, wq, wk, wv, wo, mask=None):
    H, _, d_k = wq.shape
    d_v = wv.shape[-1]
    heads = []
    for h in range(H):
        q = enc_q @ wq[h]
        k = enc_k @ wk[h]
        v = enc_v @ wv[h]
        sims = (q @ k.T) / jnp.sqrt(jnp.float32(d_k))
        if mask is not None:
            sims = jnp.where(mask, -1e9, sims)
        heads.append(jax.nn.softmax(sims, axis=1) @ v)
    cat = jnp.concatenate(heads, axis=1)
    return cat @ wo.reshape(H * d_v, -1)


def _max_rel_err(got, want):
    denom = jnp.maximum(jnp.max(jnp.abs(want)), 1e-6)
    return float(jnp.max(jnp.abs(got - want)) / denom)


if __name__ == "__main__":
    key = jax.random.PRNGKey(0)

    # ---- Test 1: tiny shapes (single tile per grid axis) ----
    Sq, Sk, d_model, d_k, d_v, H = 8, 8, 8, 8, 8, 2
    ks = jax.random.split(key, 7)
    enc_q = jax.random.normal(ks[0], (Sq, d_model), dtype=jnp.float32)
    enc_k = jax.random.normal(ks[1], (Sk, d_model), dtype=jnp.float32)
    enc_v = jax.random.normal(ks[2], (Sk, d_model), dtype=jnp.float32)
    wq = jax.random.normal(ks[3], (H, d_model, d_k), dtype=jnp.float32) * 0.5
    wk = jax.random.normal(ks[4], (H, d_model, d_k), dtype=jnp.float32) * 0.5
    wv = jax.random.normal(ks[5], (H, d_model, d_v), dtype=jnp.float32) * 0.5
    wo = jax.random.normal(ks[6], (H, d_v, d_model), dtype=jnp.float32) * 0.5
    causal_mask = jnp.triu(jnp.ones((Sq, Sk), dtype=bool), k=1)

    ref_nm = reference_mha(enc_q, enc_k, enc_v, wq, wk, wv, wo)
    ref_m = reference_mha(enc_q, enc_k, enc_v, wq, wk, wv, wo, causal_mask)

    out_nm = multi_head_attention(enc_q, enc_k, enc_v, wq, wk, wv, wo)
    out_dense = multi_head_attention(enc_q, enc_k, enc_v, wq, wk, wv, wo,
                                     mask=causal_mask)
    out_causal = multi_head_attention(enc_q, enc_k, enc_v, wq, wk, wv, wo,
                                      causal=True)
    jax.block_until_ready((out_nm, out_dense, out_causal))
    # bf16 MXU operands (f32 accumulation) -> loosened tolerance vs f32 reference
    assert _max_rel_err(out_nm, ref_nm) < 5e-2, _max_rel_err(out_nm, ref_nm)
    assert _max_rel_err(out_dense, ref_m) < 5e-2, _max_rel_err(out_dense, ref_m)
    assert _max_rel_err(out_causal, ref_m) < 5e-2, _max_rel_err(out_causal, ref_m)

    # ---- Test 2: multi-tile flash grid (2 q-tiles x 4 heads x 2 kv-tiles) ----
    Sq2, Sk2, d_model2, d_k2, d_v2, H2 = 256, 256, 8, 16, 16, 4
    ks2 = jax.random.split(jax.random.PRNGKey(1), 7)
    eq2 = jax.random.normal(ks2[0], (Sq2, d_model2), dtype=jnp.float32)
    ek2 = jax.random.normal(ks2[1], (Sk2, d_model2), dtype=jnp.float32)
    ev2 = jax.random.normal(ks2[2], (Sk2, d_model2), dtype=jnp.float32)
    wq2 = jax.random.normal(ks2[3], (H2, d_model2, d_k2), dtype=jnp.float32) * 0.3
    wk2 = jax.random.normal(ks2[4], (H2, d_model2, d_k2), dtype=jnp.float32) * 0.3
    wv2 = jax.random.normal(ks2[5], (H2, d_model2, d_v2), dtype=jnp.float32) * 0.3
    wo2 = jax.random.normal(ks2[6], (H2, d_v2, d_model2), dtype=jnp.float32) * 0.3
    causal_mask2 = jnp.triu(jnp.ones((Sq2, Sk2), dtype=bool), k=1)

    ref2 = reference_mha(eq2, ek2, ev2, wq2, wk2, wv2, wo2, causal_mask2)
    out2_causal = multi_head_attention(eq2, ek2, ev2, wq2, wk2, wv2, wo2,
                                       causal=True, q_tile=128, k_tile=128)
    out2_dense = multi_head_attention(eq2, ek2, ev2, wq2, wk2, wv2, wo2,
                                      mask=causal_mask2, q_tile=128, k_tile=128)
    jax.block_until_ready((out2_causal, out2_dense))
    assert _max_rel_err(out2_causal, ref2) < 5e-2, _max_rel_err(out2_causal, ref2)
    assert _max_rel_err(out2_dense, ref2) < 5e-2, _max_rel_err(out2_dense, ref2)

    print("KERNEL_OK")
</pallas_src>

<mosaic_0001>
module attributes {stable_mosaic.version = 11 : i64} {
  func.func @_proj_head_kernel(%arg0: i32, %arg1: i32, %arg2: memref<8x8xf32, #tpu.memory_space<vmem>>, %arg3: memref<1x8x8xbf16, #tpu.memory_space<vmem>>, %arg4: memref<1x8x8xbf16, #tpu.memory_space<vmem>>) attributes {dimension_semantics = [#tpu.dimension_semantics<parallel>, #tpu.dimension_semantics<parallel>], iteration_bounds = array<i64: 1, 2>, scalar_prefetch = 0 : i64, scratch_operands = 0 : i64, tpu.core_type = #tpu.core_type<tc>, window_params = [{transform_indices = @transform_0, window_bounds = array<i64: 8, 8>}, {transform_indices = @transform_1, window_bounds = array<i64: 1, 8, 8>}, {transform_indices = @transform_2, window_bounds = array<i64: 1, 8, 8>}]} {
    %c0 = arith.constant 0 : index
    %c0_0 = arith.constant 0 : index
    %0 = vector.load %arg2[%c0, %c0_0] : memref<8x8xf32, #tpu.memory_space<vmem>>, vector<8x8xf32>
    %1 = arith.truncf %0 : vector<8x8xf32> to vector<8x8xbf16>
    %c0_1 = arith.constant 0 : index
    %c0_2 = arith.constant 0 : index
    %c0_3 = arith.constant 0 : index
    %2 = vector.load %arg3[%c0_1, %c0_2, %c0_3] : memref<1x8x8xbf16, #tpu.memory_space<vmem>>, vector<1x8x8xbf16>
    %3 = vector.shape_cast %2 : vector<1x8x8xbf16> to vector<8x8xbf16>
    %cst = arith.constant dense<0.000000e+00> : vector<8x8xf32>
    %4 = tpu.matmul %1, %3, %cst {dimension_numbers = #tpu.dot_dimension_numbers<[1], [0], [0], [1], [0, 0, 1, 1], [], []>} : vector<8x8xbf16>, vector<8x8xbf16>, vector<8x8xf32> -> vector<8x8xf32>
    %5 = arith.truncf %4 : vector<8x8xf32> to vector<8x8xbf16>
    %c0_4 = arith.constant 0 : index
    %c0_5 = arith.constant 0 : index
    %c0_6 = arith.constant 0 : index
    %6 = vector.load %arg4[%c0_4, %c0_5, %c0_6] : memref<1x8x8xbf16, #tpu.memory_space<vmem>>, vector<1x8x8xbf16>
    %7 = vector.shape_cast %6 : vector<1x8x8xbf16> to vector<8x8xbf16>
    %8 = vector.shape_cast %5 : vector<8x8xbf16> to vector<1x8x8xbf16>
    tpu.vector_store %arg4[%c0_4, %c0_5, %c0_6], %8 {strides = array<i32>} : memref<1x8x8xbf16, #tpu.memory_space<vmem>>, vector<1x8x8xbf16>,
    return
  }
  func.func @transform_0(%arg0: i32, %arg1: i32) -> (i32, i32) {
    %c0_i32 = arith.constant 0 : i32
    %c0_i32_0 = arith.constant 0 : i32
    return %arg0, %c0_i32 : i32, i32
  }
  func.func @transform_1(%arg0: i32, %arg1: i32) -> (i32, i32, i32) {
    %c0_i32 = arith.constant 0 : i32
    %c0_i32_0 = arith.constant 0 : i32
    %c0_i32_1 = arith.constant 0 : i32
    return %arg1, %c0_i32, %c0_i32_0 : i32, i32, i32
  }
  func.func @transform_2(%arg0: i32, %arg1: i32) -> (i32, i32, i32) {
    %c0_i32 = arith.constant 0 : i32
    %c0_i32_0 = arith.constant 0 : i32
    return %arg1, %arg0, %c0_i32 : i32, i32, i32
  }
}

</mosaic_0001>

<bundles_post_ra>
// kernel: tpu_custom_call.1
= control target key start
LH: loop header
LB: loop body
LE: loop exit
PB: predicated region body
PF: predicated region fallthrough
CT: control target
= control target key end

     0   :  { %7 = vsyncpa [#allocation3], 0  ;;  %s837_s0 = inlined_call_operand.hbm [shape: f32[8,8], index: 0, kind: input, shape index: {}]   ;;  %s838_s1 = inlined_call_operand.hbm [shape: bf16[2,8,8], index: 1, kind: input, shape index: {}]   ;;  %s839_s2 = inlined_call_operand.hbm [shape: bf16[2,8,8], index: 2, kind: output, shape index: {}]  }
   0x1   :  { %8 = vsyncpa [#allocation6], 0 }
   0x2   :  { %10 = vsyncpa [#allocation6 + $0x1], 0 }
   0x3   :  { %11 = vsyncpa [#allocation4], 0 }
   0x4   :  { %13 = vsyncpa [#allocation4 + $0x1], 0  ;;  %s621_s9 = smov 0   ;;  %s623_s10 = smov 0  }
   0x5   :  { %s625_s11 = smov 0   ;;  %s627_s12 = smov 0  }
   0x6   :  { %s629_s13 = smov 0   ;;  %s631_s14 = smov 0  }
   0x7 LB: > { %s356_s15 = sadd.s32 4294967295, %s599_s14   ;;  %s357_s16 = sadd.s32 4294967294, %s599_s14   ;;  %s599_s14 = sphi %s631_s14, %s19_s14   ;;  %s595_s13 = sphi %s629_s13, %s864_s13   ;;  %s591_s12 = sphi %s627_s12, %s863_s12   ;;  %s587_s11 = sphi %s625_s11, %s862_s11   ;;  %s583_s10 = sphi %s623_s10, %s861_s10   ;;  %s579_s9 = sphi %s621_s9, %s860_s9  }
   0x8   : > { %p77_p0 = scmp.ne.s32.totalorder %s583_s10, %s579_s9  ;;  %p655_p1 = scmp.eq.s32.totalorder %s356_s15, 0 }
   0x9   : > { %p659_p2 = scmp.eq.s32.totalorder %s356_s15, 1  ;;  %p109_p3 = scmp.eq.s32.totalorder %s357_s16, 1 }
   0xa   : > { %s844_s17 = scalar_select %p655_p1, 1, 0 }
   0xb   : > { %s845_s18 = scalar_select %p659_p2, 1, 0 }
   0xc   : > { %p665_p4 = por %p655_p1, %p77_p0  ;;  %p358_p5 = scmp.ge.s32.totalorder %s599_s14, 1 }
   0xd   : > { %p670_p6 = por %p109_p3, %p77_p0  ;;  %p116_p7 = scmp.lt.s32.totalorder %s599_s14, 3 }
   0xe   : > { %s846_s19 = scalar_select %p665_p4, 1, 0 }
   0xf   : > { %s847_s20 = scalar_select %p670_p6, 1, 0 }
  0x10   : > { %p675_p8 = pnand %p358_p5, %p116_p7  ;;  %s601_s22 = smov [#allocation2]  }
  0x11   : > { %s131_s23 = sshll.u32 %s601_s22, 4  ;;  %s28_s25 = sadd.s32 1, %s595_s13  ;;  %s132_s23 = int_to_ptr.vmem [resolvable:$true] %s131_s23 }
  0x12   : > { %s848_s21 = scalar_select %p675_p8, 1, 0 }
  0x13   : > { %p388_p10 = pneg %p675_p8  ;;  %s64_s26 = sadd.s32 1, %s587_s11 }
  0x14   : > { %p690_p12 = scmp.ge.s32.totalorder %s28_s25, 2  ;;  %s455_s30 = scalar_lea.hbm %s837_s0, 128 }
  0x15   : > { %p684_p11 = pnand %p388_p10, %p655_p1  ;;  %p456_p13 = scmp.ne.s32.totalorder %s837_s0, %s455_s30 }
  0x16   : > { %s850_s27 = scalar_select %p690_p12, 1, 0 }
  0x17   : > { %p457_p0 = pneg %p684_p11  ;;  %p462_p7 = scmp.lt.u32.totalorder %s455_s30, %s837_s0 }
  0x19   : > { %p458_p3 = pnand %p457_p0, %p456_p13 }
  0x1b   : > { %p459_p5 = pneg %p458_p3 }
  0x1d   : > { %p464_p10 = pnand %p462_p7, %p459_p5 }
  0x1f   : > { %467 = shalt.err (!%p464_p10)
}
  0x20   : > { %s468_s7 = scalar_lea.vmem %s132_s23, 128  ;;  %p476_p1 = scmp.lt.s32.totalorder %s132_s23, %s132_s23 }
  0x21   : > { %p469_p9 = scmp.ne.s32.totalorder %s132_s23, %s468_s7  ;;  %p477_p8 = scmp.lt.s32.totalorder %s468_s7, %s468_s7 }
  0x23   : > { %p471_p6 = pnand %p469_p9, %p457_p0  ;;  %p478_p2 = por %p477_p8, %p476_p1 }
  0x25   : > { %p472_p4 = pneg %p471_p6 }
  0x27   : > { %p479_p12 = pnand %p478_p2, %p472_p4 }
  0x29   : > { %482 = shalt.err (!%p479_p12)
}
  0x2a   : > { %391 = dma.hbm_to_vmem [thread:$0]  (!%p684_p11), %s837_s0, 128, %s132_s23, [#allocation3]  }
  0x2b   : > { %p851_p1 = scmp.ne.s32.totalorder %s850_s27, 0  ;;  %p71_p2 = scmp.ne.s32.totalorder %s587_s11, %s583_s10 }
  0x2c   : > { %p72_p4 = scmp.eq.s32.totalorder %s599_s14, 0  ;;  %p401_p6 = scmp.lt.s32.totalorder %s599_s14, 2 }
  0x2d   : > { %s866_s25 = smov (%p851_p1, %s28_s25), 0  ;;  %p852_p12 = scmp.ne.s32.totalorder %s845_s18, 0 }
  0x2e   : > { %s61_s16 = ssub.s32 %s595_s13, %s866_s25  ;;  %p73_p9 = por %p72_p4, %p71_p2 }
  0x2f   : > { %p62_p8 = scmp.eq.s32.totalorder %s61_s16, 0  ;;  %p722_p13 = por %p852_p12, %p71_p2 }
  0x30   : > { %s142_s24 = sand.u32 1, %s587_s11   ;;  %s362_s27 = sshll.u32 %s595_s13, 6 }
  0x31   : > { %s730_s28 = scalar_select %p62_p8, %s587_s11, %s64_s26  }
  0x32   : > { %s361_s23 = sshll.u32 %s142_s24, 2  ;;  %s736_s3 = scalar_lea.hbm %s838_s1, %s362_s27 }
  0x33   : > { %s146_s18 = scalar_lea.vmem [#allocation5], %s361_s23  ;;  %p740_p11 = pnand %p401_p6, %p73_p9 }
  0x34   : > { %s153_s4 = sshll.u32 %s146_s18, 4  ;;  %s143_s26 = scalar_lea.sflag [#allocation6], %s142_s24  ;;  %s738_s4 = int_to_ptr.vmem [resolvable:$true] %s153_s4 }
  0x35   : > { %s483_s6 = scalar_lea.hbm %s736_s3, 64  ;;  %p485_p3 = pneg %p740_p11 }
  0x36   : > { %p484_p0 = scmp.ne.s32.totalorder %s736_s3, %s483_s6  ;;  %s488_s15 = scalar_lea.hbm %s838_s1, 128 }
  0x37   : > { %p489_p10 = scmp.lt.u32.totalorder %s736_s3, %s838_s1  ;;  %p490_p1 = scmp.lt.u32.totalorder %s488_s15, %s483_s6 }
  0x38   : > { %p486_p5 = pnand %p485_p3, %p484_p0  ;;  %p492_p4 = scmp.lt.u32.totalorder %s483_s6, %s736_s3 }
  0x39   : > { %p491_p2 = por %p490_p1, %p489_p10 }
  0x3a   : > { %p487_p7 = pneg %p486_p5 }
  0x3b   : > { %p493_p6 = por %p492_p4, %p491_p2 }
  0x3d   : > { %p494_p8 = pnand %p493_p6, %p487_p7 }
  0x3f   : > { %497 = shalt.err (!%p494_p8)
}
  0x40   : > { %s498_s24 = scalar_lea.vmem %s738_s4, 64  ;;  %s602_s27 = smov [#allocation5]  }
  0x41   : > { %p499_p9 = scmp.ne.s32.totalorder %s738_s4, %s498_s24  ;;  %s503_s29 = sshll.u32 %s602_s27, 4  ;;  %s504_s29 = int_to_ptr.vmem [resolvable:$false] %s503_s29 }
  0x42   : > { %s505_s30 = scalar_lea.vmem %s504_s29, 128  ;;  %p506_p5 = scmp.lt.s32.totalorder %s738_s4, %s504_s29 }
  0x43   : > { %p501_p12 = pnand %p499_p9, %p485_p3  ;;  %p507_p10 = scmp.lt.s32.totalorder %s505_s30, %s498_s24 }
  0x45   : > { %p502_p0 = pneg %p501_p12  ;;  %p508_p1 = por %p507_p10, %p506_p5 }
  0x47   : > { %p509_p2 = pnand %p508_p1, %p502_p0 }
  0x49   : > { %512 = shalt.err (!%p509_p2)
}
  0x4a   : > { %395 = dma.hbm_to_vmem [thread:$0]  (!%p740_p11), %s736_s3, 64, %s738_s4, %s143_s26  }
  0x4b   : > { %p855_p7 = scmp.ne.s32.totalorder %s848_s21, 0 }
  0x4c   : > { %p856_p3 = scmp.ne.s32.totalorder (!%p855_p7), %s844_s17, 0 }
  0x4d   : > { %162 = sbr.rel (%p855_p7) target bundleno = 322 (0x142), region = 28 }
  0x54   : > { %566 = dma.done.wait (%p856_p3), [#allocation3], 128  }
  0x55   : > { %568 = vsyncadd (%p856_p3), [#allocation3], 4294967168  ;;  %s776_s18 = sand.u32 1, %s583_s10   ;;  %p857_p4 = scmp.ne.s32.totalorder %s846_s19, 0 }
  0x56   : > { %s365_s6 = sshll.u32 %s776_s18, 2  ;;  %s169_s5 = scalar_lea.sflag [#allocation6], %s776_s18 }
  0x57   : > { %s172_s7 = scalar_lea.vmem [#allocation5], %s365_s6 }
  0x58   : > { %570 = dma.done.wait (%p857_p4), %s169_s5, 64  }
  0x59   : > { %572 = vsyncadd (%p857_p4), %s169_s5, 4294967232  ;;  %v603_v0 = vmov 0.0   ;;  %vm604_vm0 = vmmov 0   ;;  %vm201_vm1 = vcmask 1043456   ;;  %v196_v1 = vld [vmem:[%s172_s7] sm:$0xf] }
  0x5a   : > { %374 = vmatprep.subr.bf16.mxu0 %v603_v0  ;;  %376 = vmatprep.mubr.msk.bf16.mxu0 %vm604_vm0, %v603_v0  ;;  %v194_v2 = vld [vmem:[#allocation2] sm:$0xff]  ;;  %v203_v3 = vsel %vm201_vm1, %v196_v1, 0  ;;  %vm197_vm2 = vcmask 64512   ;;  %s369_s17 = sshll.u32 %s591_s12, 6  ;;  %s192_s21 = scalar_lea.vmem [#allocation7], %s365_s6  ;;  %vm246_vm3 = vcmask 60416  }
  0x5b   : > { %v195_v4 = vpack.c.bf16 %v194_v2, %v194_v2  ;;  %375 = vmatpush3.bf16.msra.mxu0 %v203_v3  ;;  %s263_s3 = sshll.u32 %s192_s21, 4  ;;  %s788_s26 = scalar_lea.hbm %s839_s2, %s369_s17  ;;  %s790_s3 = int_to_ptr.vmem [resolvable:$true] %s263_s3 }
  0x5c   : > { %s249_s12 = scalar_lea.sflag [#allocation4], %s776_s18  ;;  %s513_s8 = scalar_lea.vmem %s790_s3, 64 }
  0x5d   : > { %p514_p11 = scmp.ne.s32.totalorder %s790_s3, %s513_s8  ;;  %s605_s15 = smov [#allocation7]  }
  0x5e   : > { %377 = vmatmul.mubr.msk.bf16.vlgmr.msra.gmra.mrb[0].mxu0 %vm197_vm2, %v195_v4  ;;  %s517_s16 = sshll.u32 %s605_s15, 4  ;;  %s518_s16 = int_to_ptr.vmem [resolvable:$false] %s517_s16 }
  0x5f   : > { %p515_p6 = pnand %p514_p11, %p722_p13  ;;  %s519_s23 = scalar_lea.vmem %s518_s16, 128 }
  0x60   : > { %p520_p9 = scmp.lt.s32.totalorder %s790_s3, %s518_s16  ;;  %p521_p12 = scmp.lt.s32.totalorder %s519_s23, %s513_s8 }
  0x61   : > { %p516_p8 = pneg %p515_p6 }
  0x62   : > { %p522_p0 = por %p521_p12, %p520_p9 }
  0x64   : > { %p523_p5 = pnand %p522_p0, %p516_p8 }
 0x131   : > { %v239_v5 = vpop.f32.mrb[0].mxu0 }
 0x132   : > { %v245_v6 = vpack.c.bf16 %v239_v5, %v239_v5  ;;  %v378_v7 = vpop.f32.mrb[1].mxu0 }
 0x133   : > { %v242_v8 = vpop.f32.mrb[2].mxu0 }
 0x134   : > { %v379_v9 = vpop.f32.mrb[3].mxu0  ;;  %247 = vst.msk [vmem:[%s192_s21] sm:$0xf] %vm246_vm3, %v245_v6 }
 0x135   : > { %526 = shalt.err (!%p523_p5)
}
 0x136   : > { %s527_s24 = scalar_lea.hbm %s788_s26, 64  ;;  %s531_s30 = scalar_lea.hbm %s839_s2, 128 }
 0x137   : > { %p528_p10 = scmp.ne.s32.totalorder %s788_s26, %s527_s24  ;;  %p532_p7 = scmp.lt.u32.totalorder %s788_s26, %s839_s2 }
 0x138   : > { %p533_p3 = scmp.lt.u32.totalorder %s531_s30, %s527_s24  ;;  %p535_p11 = scmp.lt.u32.totalorder %s527_s24, %s788_s26 }
 0x139   : > { %p529_p1 = pnand %p528_p10, %p722_p13 }
 0x13a   : > { %p534_p4 = por %p533_p3, %p532_p7 }
 0x13b   : > { %p530_p2 = pneg %p529_p1 }
 0x13c   : > { %p536_p6 = por %p535_p11, %p534_p4 }
 0x13e   : > { %p537_p8 = pnand %p536_p6, %p530_p2 }
 0x140   : > { %540 = shalt.err (!%p537_p8)
}
 0x141   : > { %386 = dma.vmem_to_hbm [thread:$0]  (%p722_p13), %s790_s3, 64, %s788_s26, %s249_s12  }
 0x142 PF: > { %s275_s5 = sand.u32 1, %s579_s9   ;;  %p858_p9 = scmp.ne.s32.totalorder %s847_s20, 0 }
 0x143   : > { %p859_p12 = scmp.ge.s32.totalorder %s599_s14, 2  ;;  %s276_s7 = scalar_lea.sflag [#allocation4], %s275_s5 }
 0x145   : > { %p397_p0 = pnand %p859_p12, %p858_p9 }
 0x147   : > { %574 = dma.done.wait (!%p397_p0), %s276_s7, 64  }
 0x148   : > { %576 = vsyncadd (!%p397_p0), %s276_s7, 4294967232  ;;  %s19_s14 = sadd.s32 1, %s599_s14   ;;  %s860_s9 = smov %s583_s10 }
 0x149   : > { %p16_p5 = scmp.ge.s32.totalorder %s19_s14, 4   ;;  %s861_s10 = smov %s587_s11 }
 0x14a   : > { %s862_s11 = smov %s730_s28  ;;  %s863_s12 = smov %s595_s13 }
 0x14b   : > { %s864_s13 = smov %s866_s25  ;;  %18 = sbr.rel (!%p16_p5) target bundleno = 7 (0x7), region = 79 }
 0x152   :  { %281 = vsyncpa [#allocation3], 1 }
 0x153   :  { %283 = vsyncpa [#allocation3 + $0x1], 1 }
 0x154   :  { %284 = vsyncpa [#allocation6], 1 }
 0x155   :  { %286 = vsyncpa [#allocation6 + $0x1], 1 }
 0x156   :  { %287 = vsyncpa [#allocation4], 1 }
 0x157   :  { %289 = vsyncpa [#allocation4 + $0x1], 1 }

</bundles_post_ra>
